<compile_context>
chip_gen: v7x
topology: tpu7x:2x2x1
jax: 0.10.0
libtpu: 0.0.40
codegen_flags: <defaults>
</compile_context>

<pallas_src>
import functools

import jax
import jax.numpy as jnp
from jax import lax
from jax.experimental import pallas as pl
from jax.experimental.pallas import tpu as pltpu

NEAR = 0.001
FAR = 100.0
_LOG2E = 1.4426950408889634
_ALPHA_MIN = 1.0 / 255.0
_T_EPS = 1e-4


def _round_up(x, m):
    return ((x + m - 1) // m) * m


# ----------------------------------------------------------------------------- #
# Pallas kernel: (camera, pixel-tile, hit-chunk) grid, MXU compositing           #
# ----------------------------------------------------------------------------- #
def _render_kernel(chunk_idx_ref, counts_ref, bg_ref, pixfeat_ref, tri_ref, gtab_ref,
                   out_ref, acc_ref, tvis_ref, tmax_ref, *, n_tiles, n_k, far):
    del chunk_idx_ref  # consumed by the gaussian-table index_map only
    cam = pl.program_id(0)
    tile = pl.program_id(1)
    k = pl.program_id(2)

    @pl.when(k == 0)
    def _init():
        acc_ref[...] = jnp.zeros_like(acc_ref)
        tvis_ref[...] = jnp.ones_like(tvis_ref)
        tmax_ref[0] = jnp.float32(1.0)

    count = counts_ref[cam * n_tiles + tile]
    active = jnp.logical_and(k < count, tmax_ref[0] > _T_EPS)

    @pl.when(active)
    def _composite():
        gtab = gtab_ref[0]                       # (16, Gc): rows 0-7 quad^T (base-2, opacity
        quad = gtab[0:8, :]                      #  folded), rows 8-11 rgbd^T, rest zero.
        rgbdT = gtab[8:16, :]                    # (8, Gc)
        pixf = pixfeat_ref[...]                  # (8, TP): [x^2, xy, y^2, x, y, 1, 0, 0]
        gc = quad.shape[1]

        # log2(op * exp(power)) per (gaussian, pixel): one MXU matmul contracting the
        # 8-feature axis directly.  HIGHEST precision: expanded quadratic has large
        # cancelling terms (pixel coords are re-centered on host to curb magnitudes).
        power2 = lax.dot_general(
            quad, pixf, (((0,), (0,)), ((), ())),
            precision=lax.Precision.HIGHEST,
            preferred_element_type=jnp.float32)                            # (Gc, TP)
        alpha = jnp.minimum(0.99, jnp.exp2(power2))
        alpha = jnp.where(alpha < _ALPHA_MIN, 0.0, alpha)                  # 1/255 skip
        om = 1.0 - alpha                                                   # in [0.01, 1]
        log2_om = jnp.log2(om)

        # Exclusive front-to-back prefix product of (1 - alpha) in log2 space, via the
        # constant strictly-lower-triangular ones matrix on the MXU.  DEFAULT precision
        # (log2_om in [-6.7, 0]); this is the FLOP-dominant matmul.
        trans = jnp.exp2(jnp.dot(tri_ref[...], log2_om,
                                 precision=lax.Precision.DEFAULT,
                                 preferred_element_type=jnp.float32))      # (Gc, TP)

        t_in = tvis_ref[...]                                               # (1, TP)
        weights = (alpha * trans) * t_in                                   # (Gc, TP)
        acc_ref[...] += jnp.dot(rgbdT, weights,
                                precision=lax.Precision.HIGHEST,
                                preferred_element_type=jnp.float32)        # (8, TP)
        # Full chunk transmittance = last exclusive-prefix row * last (1-alpha) row.
        t_out = t_in * trans[gc - 1:gc, :] * om[gc - 1:gc, :]
        tvis_ref[...] = t_out
        # Tile-level early termination (conservative form of the CUDA T < 1e-4 rule).
        tmax_ref[0] = jnp.max(t_out)

    @pl.when(k == n_k - 1)
    def _finalize():
        T = tvis_ref[...]                                                  # (1, TP)
        acc = acc_ref[...]                                                 # (8, TP)
        r = jnp.clip(acc[0:1] + T * bg_ref[0], 0.0, 1.0) * 2.0 - 1.0
        g = jnp.clip(acc[1:2] + T * bg_ref[1], 0.0, 1.0) * 2.0 - 1.0
        b = jnp.clip(acc[2:3] + T * bg_ref[2], 0.0, 1.0) * 2.0 - 1.0
        mask = jnp.clip(1.0 - T, 0.0, 1.0)
        depth = acc[3:4] + far * (1.0 - mask)
        pad = jnp.zeros((3, T.shape[1]), jnp.float32)
        # Single unmasked (8, TP) store (channel dim padded to 8; host slices back to 5).
        out_ref[0] = jnp.concatenate([r, g, b, depth, mask, pad], axis=0)


# ----------------------------------------------------------------------------- #
# JAX glue: camera matrices + per-gaussian projection / 2D covariance            #
# ----------------------------------------------------------------------------- #
def _get_projection_matrix_T(znear, zfar, fovx, fovy):
    tan_half_x = jnp.tan(0.5 * fovx)
    tan_half_y = jnp.tan(0.5 * fovy)
    top = tan_half_y * znear
    right = tan_half_x * znear
    P = jnp.zeros((4, 4), jnp.float32)
    P = P.at[0, 0].set(znear / right)
    P = P.at[1, 1].set(znear / top)
    P = P.at[3, 2].set(1.0)
    P = P.at[2, 2].set(zfar / (zfar - znear))
    P = P.at[2, 3].set(-(zfar * znear) / (zfar - znear))
    return P.T  # rearrange 'i j -> j i'


def _viewpoint_cameras(cam):
    # cam: (3, 7) -> K (3,3), Rt (3,4)  (camera-to-world pose)
    K = cam[:, :3]
    Rt = cam[:, 3:]
    fx, fy = K[0, 0], K[1, 1]
    cx, cy = K[0, 2], K[1, 2]
    tanfovx = cx / fx
    tanfovy = cy / fy
    fovx = 2.0 * jnp.arctan(tanfovx)
    fovy = 2.0 * jnp.arctan(tanfovy)
    proj_T = _get_projection_matrix_T(NEAR, FAR, fovx, fovy)
    bottom = jnp.array([[0.0, 0.0, 0.0, 1.0]], jnp.float32)
    pose = jnp.concatenate([Rt, bottom], axis=0)
    view_T = jnp.linalg.inv(pose).T          # world-to-camera, transposed (row-vector conv.)
    full_proj_T = view_T @ proj_T
    return tanfovx, tanfovy, view_T, full_proj_T


def _quat_to_rotmat(q_wxyz):
    q = q_wxyz / jnp.linalg.norm(q_wxyz, axis=-1, keepdims=True)
    r, x, y, z = q[:, 0], q[:, 1], q[:, 2], q[:, 3]
    R = jnp.stack([
        jnp.stack([1 - 2 * (y * y + z * z), 2 * (x * y - r * z), 2 * (x * z + r * y)], -1),
        jnp.stack([2 * (x * y + r * z), 1 - 2 * (x * x + z * z), 2 * (y * z - r * x)], -1),
        jnp.stack([2 * (x * z - r * y), 2 * (y * z + r * x), 1 - 2 * (x * x + y * y)], -1),
    ], axis=-2)
    return R


def _preprocess_one(xyz, colors, opacity, scales, rot_xyzw, cam, h, w):
    """One camera: project gaussians, pack quadratic / color tables, sort front-to-back."""
    tanfovx, tanfovy, view_T, full_proj_T = _viewpoint_cameras(cam)
    g = xyz.shape[0]
    ones = jnp.ones((g, 1), jnp.float32)
    xyz_h = jnp.concatenate([xyz, ones], axis=-1)

    p_hom = xyz_h @ full_proj_T
    p_w = 1.0 / (p_hom[:, 3:4] + 1e-7)
    p_proj = p_hom[:, :3] * p_w
    p_view = xyz_h @ view_T
    depth = p_view[:, 2]

    # rotations[i][:, [3, 0, 1, 2]]  (xyzw -> wxyz)
    rot_wxyz = rot_xyzw[:, jnp.array([3, 0, 1, 2])]
    R = _quat_to_rotmat(rot_wxyz)
    Sigma = jnp.einsum('gij,gj,gkj->gik', R, scales ** 2, R)   # 3D covariance

    focal_x = w / (2.0 * tanfovx)
    focal_y = h / (2.0 * tanfovy)
    tz = p_view[:, 2]
    limx, limy = 1.3 * tanfovx, 1.3 * tanfovy
    tx = jnp.clip(p_view[:, 0] / tz, -limx, limx) * tz
    ty = jnp.clip(p_view[:, 1] / tz, -limy, limy) * tz
    zeros = jnp.zeros_like(tz)
    J = jnp.stack([
        jnp.stack([focal_x / tz, zeros, -focal_x * tx / (tz * tz)], -1),
        jnp.stack([zeros, focal_y / tz, -focal_y * ty / (tz * tz)], -1),
    ], axis=-2)                                                # (G, 2, 3)
    W_rot = view_T[:3, :3].T                                   # world-to-camera rotation
    Tm = jnp.einsum('gij,jk->gik', J, W_rot)
    cov2d = jnp.einsum('gij,gjk,glk->gil', Tm, Sigma, Tm)      # EWA splat
    cov2d = cov2d.at[:, 0, 0].add(0.3)
    cov2d = cov2d.at[:, 1, 1].add(0.3)
    a = cov2d[:, 0, 0]
    b = cov2d[:, 0, 1]
    c = cov2d[:, 1, 1]
    det = a * c - b * b
    det_safe = jnp.where(det == 0.0, 1.0, det)
    conA = c / det_safe
    conB = -b / det_safe
    conC = a / det_safe

    px = ((p_proj[:, 0] + 1.0) * w - 1.0) * 0.5                # ndc2Pix
    py = ((p_proj[:, 1] + 1.0) * h - 1.0) * 0.5
    valid = (det > 0.0) & (depth > 0.2)                        # near / degenerate culling
    vf = valid.astype(jnp.float32)
    op = jnp.where(valid, opacity[:, 0], 0.0)

    # Re-centered pixel coordinates (also in pixfeat) to curb f32 cancellation in the
    # expanded quadratic form.
    pxc = px - 0.5 * (w - 1)
    pyc = py - 0.5 * (h - 1)
    # power(x, y) expanded in [x^2, xy, y^2, x, y, 1]; log2(e) folded so the kernel uses
    # exp2/log2 (EUP native).  log2(opacity) is folded into the constant term after padding.
    quad6 = jnp.stack([
        -0.5 * conA,
        -conB,
        -0.5 * conC,
        conA * pxc + conB * pyc,
        conC * pyc + conB * pxc,
        -0.5 * (conA * pxc * pxc + conC * pyc * pyc) - conB * pxc * pyc,
    ], axis=-1) * (_LOG2E * vf[:, None])

    rgbd4 = jnp.stack([colors[:, 0], colors[:, 1], colors[:, 2], depth],
                      axis=-1) * vf[:, None]

    # Conservative screen-space y extent for row-band culling: at |dy| >= 3.5*sigma_y the
    # gaussian weight <= exp(-6.125) < 1/255, so skipping it matches the alpha threshold.
    ry = 3.5 * jnp.sqrt(jnp.maximum(c, 0.0)) + 1.0

    sort_key = jnp.where(valid, depth, jnp.float32(1e10))
    order = jnp.argsort(sort_key)                              # global front-to-back sort
    # TODO(synk): the CUDA rasterizer sorts/culls per 16x16 tile; here we sort globally.
    take = lambda arr: jnp.take(arr, order, axis=0)
    return (take(quad6), take(op), take(rgbd4), take(py), take(ry), take(valid))


def gaussian_renderer_forward(cameras, gaussians, h, w, bg_color, max_hit_chunks=None):
    """cameras: (B, N, 3, 7); gaussians = (xyz, features, opacity, scales, rotations)."""
    xyz, features, opacity, scales, rotations = gaussians
    B, N = cameras.shape[:2]
    G = xyz.shape[1]
    colors = jnp.squeeze(features, axis=2)                     # features[i].squeeze(1)

    prep = functools.partial(_preprocess_one, h=h, w=w)
    prep_n = jax.vmap(lambda cam, xb, cb, ob, sb, rb: prep(xb, cb, ob, sb, rb, cam),
                      in_axes=(0, None, None, None, None, None))
    prep_bn = jax.vmap(prep_n, in_axes=(0, 0, 0, 0, 0, 0))
    quad6, op, rgbd4, py, ry, valid = prep_bn(cameras, xyz, colors, opacity,
                                              scales, rotations)

    n_cams = B * N
    quad6 = quad6.reshape(n_cams, G, 6).astype(jnp.float32)
    op = op.reshape(n_cams, G).astype(jnp.float32)
    rgbd4 = rgbd4.reshape(n_cams, G, 4).astype(jnp.float32)
    py = py.reshape(n_cams, G)
    ry = ry.reshape(n_cams, G)
    valid = valid.reshape(n_cams, G)

    # ----- tiling parameters ---------------------------------------------------
    P = h * w
    TP = min(4096, _round_up(P, 128))        # lane-dense flattened-pixel tile
    P_pad = _round_up(P, TP)
    n_tiles = P_pad // TP
    Gc = min(256, _round_up(G, 8))           # gaussian chunk depth (MXU contraction)
    G_pad = _round_up(G, Gc)
    n_chunks = G_pad // Gc
    pad_g = G_pad - G

    quad6 = jnp.pad(quad6, ((0, 0), (0, pad_g), (0, 0)))
    op = jnp.pad(op, ((0, 0), (0, pad_g)))                     # padded opacity = 0
    rgbd4 = jnp.pad(rgbd4, ((0, 0), (0, pad_g), (0, 0)))
    py = jnp.pad(py, ((0, 0), (0, pad_g)))
    ry = jnp.pad(ry, ((0, 0), (0, pad_g)))
    valid = jnp.pad(valid, ((0, 0), (0, pad_g)))

    # Merged, transposed, lane-dense gaussian table: (n_cams, 16, G_pad).
    #   rows 0-5: quadratic coefficients (base-2); row 5 also carries log2(opacity)
    #             (padded / invalid gaussians get log2(1e-12) -> alpha ~ 0, masked);
    #   rows 6-7: zero;  rows 8-11: [r, g, b, depth];  rows 12-15: zero.
    row5 = quad6[..., 5] + jnp.log2(jnp.maximum(op, 1e-12))
    gtab = jnp.concatenate([
        jnp.moveaxis(quad6[..., :5], -1, 1),
        row5[:, None, :],
        jnp.zeros((n_cams, 2, G_pad), jnp.float32),
        jnp.moveaxis(rgbd4, -1, 1),
        jnp.zeros((n_cams, 4, G_pad), jnp.float32),
    ], axis=1).astype(jnp.float32)

    # Pixel feature slab (re-centered coordinates): rows [x^2, xy, y^2, x, y, 1, 0, 0].
    idx = jnp.arange(P_pad)
    xs = (idx % w).astype(jnp.float32) - 0.5 * (w - 1)
    ys = (idx // w).astype(jnp.float32) - 0.5 * (h - 1)
    one = jnp.ones_like(xs)
    zero = jnp.zeros_like(xs)
    pixfeat = jnp.stack([xs * xs, xs * ys, ys * ys, xs, ys, one, zero, zero], axis=0)

    # Constant strictly-lower-triangular ones matrix (exclusive prefix-product operand);
    # DMA'd once, VMEM-resident for the whole grid.
    tri = (jnp.arange(Gc)[None, :] < jnp.arange(Gc)[:, None]).astype(jnp.float32)

    # Chunk/tile culling: per-chunk y band via segment min/max (no (.., Gc) 4-D
    # intermediate), intersected with each pixel tile's row band.
    ymin_c = jnp.where(valid, py - ry, jnp.inf).reshape(n_cams, n_chunks, Gc).min(-1)
    ymax_c = jnp.where(valid, py + ry, -jnp.inf).reshape(n_cams, n_chunks, Gc).max(-1)
    tlo = ((jnp.arange(n_tiles) * TP) // w).astype(jnp.float32)
    thi = (((jnp.arange(n_tiles) + 1) * TP - 1) // w).astype(jnp.float32)
    hit = ((ymin_c[:, None, :] <= thi[None, :, None]) &
           (ymax_c[:, None, :] >= tlo[None, :, None]))         # (n_cams, n_tiles, n_chunks)
    counts = jnp.sum(hit, axis=-1).astype(jnp.int32)           # (n_cams, n_tiles)

    # Static length of the compacted hit-chunk grid axis.
    if max_hit_chunks is not None:
        n_k = max(1, min(int(max_hit_chunks), n_chunks))
    else:
        try:
            n_k = max(1, int(jnp.max(counts)))                 # eager call: tight bound
        except (jax.errors.ConcretizationTypeError, TypeError):
            n_k = n_chunks                                     # traced: worst case
    # TODO(synk): for production scenes bit-pack / stream this table instead of one flat
    # SMEM int32 array of size n_cams * n_tiles * n_k.

    # Compacted per-(cam, tile) list of hit chunk indices, ascending (front-to-back);
    # trailing (k >= count) slots repeat the last hit so the DMA block index is unchanged.
    chunk_ids = jnp.arange(n_chunks, dtype=jnp.int32)
    key = jnp.where(hit, chunk_ids[None, None, :], n_chunks + chunk_ids[None, None, :])
    sorted_idx = jnp.argsort(key, axis=-1).astype(jnp.int32)
    last = jnp.take_along_axis(sorted_idx, jnp.maximum(counts - 1, 0)[..., None], axis=-1)
    compact = jnp.where(
        jnp.arange(n_k, dtype=jnp.int32)[None, None, :] < counts[..., None],
        sorted_idx[..., :n_k], last).astype(jnp.int32)
    chunk_idx_flat = compact.reshape(-1)
    counts_flat = counts.reshape(-1)

    kernel = functools.partial(_render_kernel, n_tiles=n_tiles, n_k=n_k, far=FAR)

    n_steps = n_cams * n_tiles * n_k
    cost = pl.CostEstimate(
        flops=int(n_steps * (2 * Gc * TP * (16 + Gc) + 8 * Gc * TP)),
        transcendentals=int(n_steps * 3 * Gc * TP),
        bytes_accessed=int(4 * (pixfeat.size + tri.size + n_steps * 16 * Gc
                                + n_cams * 8 * P_pad)),
    )

    out = pl.pallas_call(
        kernel,
        out_shape=jax.ShapeDtypeStruct((n_cams, 8, P_pad), jnp.float32),
        grid_spec=pltpu.PrefetchScalarGridSpec(
            num_scalar_prefetch=2,                              # compacted chunk ids, counts
            grid=(n_cams, n_tiles, n_k),
            in_specs=[
                pl.BlockSpec(memory_space=pltpu.MemorySpace.SMEM),               # bg (3,)
                pl.BlockSpec((8, TP), lambda c, t, k, ci, cnt: (0, t)),          # pixfeat
                pl.BlockSpec((Gc, Gc), lambda c, t, k, ci, cnt: (0, 0)),         # tri const
                pl.BlockSpec((1, 16, Gc),                                        # gauss tab
                             lambda c, t, k, ci, cnt:
                             (c, 0, ci[(c * n_tiles + t) * n_k + k])),
            ],
            out_specs=pl.BlockSpec((1, 8, TP), lambda c, t, k, ci, cnt: (c, 0, t)),
            scratch_shapes=[pltpu.VMEM((8, TP), jnp.float32),    # rgbd(+pad) accumulator
                            pltpu.VMEM((1, TP), jnp.float32),    # transmittance T
                            pltpu.SMEM((1,), jnp.float32)],      # max(T) early termination
        ),
        compiler_params=pltpu.CompilerParams(
            dimension_semantics=("parallel", "parallel", "arbitrary"),
            vmem_limit_bytes=48 * 1024 * 1024),
        cost_estimate=cost,
    )(chunk_idx_flat, counts_flat, bg_color.astype(jnp.float32), pixfeat, tri, gtab)

    out = out[:, :5, :P].reshape(B, N, 5, h, w)
    images = out[:, :, :3]     # (B, N, 3, H, W), clamped to [0,1] then *2-1
    depths = out[:, :, 3]      # (B, N, H, W)
    masks = out[:, :, 4]       # (B, N, H, W)
    # TODO(synk): radii / viewspace_points (gradient bookkeeping for backward) not modeled;
    # depth convention is sum(w*d) + FAR*(1-mask) as in the depth-enabled rasterizer forks.
    return images, depths, masks


if __name__ == "__main__":
    key = jax.random.PRNGKey(0)
    B, N, G, H, W = 2, 2, 8, 16, 16
    kc, kx, kf, ko, ks, kr, kbg = jax.random.split(key, 7)

    # intrinsics: fx=fy=16, cx=cy=8 -> tan(fov/2)=0.5
    K = jnp.array([[16.0, 0.0, 8.0],
                   [0.0, 16.0, 8.0],
                   [0.0, 0.0, 1.0]], jnp.float32)

    def make_pose(k):
        ang = jax.random.uniform(k, (), minval=-0.1, maxval=0.1)
        ca_, sa_ = jnp.cos(ang), jnp.sin(ang)
        R = jnp.array([[ca_, -sa_, 0.0],
                       [sa_, ca_, 0.0],
                       [0.0, 0.0, 1.0]], jnp.float32)
        t = jnp.array([0.0, 0.0, -3.0], jnp.float32)
        return jnp.concatenate([R, t[:, None]], axis=1)        # (3,4) camera-to-world

    pose_keys = jax.random.split(kc, B * N)
    cameras = jnp.stack(
        [jnp.concatenate([K, make_pose(pk)], axis=1) for pk in pose_keys],
        axis=0).reshape(B, N, 3, 7).astype(jnp.float32)

    xyz = jax.random.uniform(kx, (B, G, 3), minval=-0.6, maxval=0.6)
    features = jax.random.uniform(kf, (B, G, 1, 3), minval=0.0, maxval=1.0)
    opacity = jax.random.uniform(ko, (B, G, 1), minval=0.3, maxval=1.0)
    scales = jax.random.uniform(ks, (B, G, 3), minval=0.05, maxval=0.3)
    rot = jax.random.normal(kr, (B, G, 4))
    rotations = rot / jnp.linalg.norm(rot, axis=-1, keepdims=True)   # stored as (x,y,z,w)

    bg_color = jax.random.uniform(kbg, (3,))                   # bg='random'

    gaussians = (xyz.astype(jnp.float32), features.astype(jnp.float32),
                 opacity.astype(jnp.float32), scales.astype(jnp.float32),
                 rotations.astype(jnp.float32))

    images, depths, masks = gaussian_renderer_forward(cameras, gaussians, H, W, bg_color)
    jax.block_until_ready((images, depths, masks))

    assert images.shape == (B, N, 3, H, W)
    assert depths.shape == (B, N, H, W)
    assert masks.shape == (B, N, H, W)
    assert bool(jnp.isfinite(images).all())
    assert bool(jnp.isfinite(depths).all())
    assert bool(jnp.isfinite(masks).all())
    print("KERNEL_OK")
</pallas_src>

<mosaic_0001>
module attributes {stable_mosaic.version = 11 : i64} {
  func.func @_render_kernel(%arg0: i32, %arg1: i32, %arg2: i32, %arg3: memref<4xi32, #tpu.memory_space<smem>>, %arg4: memref<4xi32, #tpu.memory_space<smem>>, %arg5: memref<3xf32, #tpu.memory_space<smem>>, %arg6: memref<8x256xf32, #tpu.memory_space<vmem>>, %arg7: memref<8x8xf32, #tpu.memory_space<vmem>>, %arg8: memref<1x16x8xf32, #tpu.memory_space<vmem>>, %arg9: memref<1x8x256xf32, #tpu.memory_space<vmem>>, %arg10: memref<8x256xf32, #tpu.memory_space<vmem>>, %arg11: memref<1x256xf32, #tpu.memory_space<vmem>>, %arg12: memref<1xf32, #tpu.memory_space<smem>>) attributes {dimension_semantics = [#tpu.dimension_semantics<parallel>, #tpu.dimension_semantics<parallel>, #tpu.dimension_semantics<arbitrary>], iteration_bounds = array<i64: 4, 1, 1>, scalar_prefetch = 2 : i64, scratch_operands = 3 : i64, tpu.core_type = #tpu.core_type<tc>, window_params = [{transform_indices = @transform_0, window_bounds = array<i64: 3>}, {transform_indices = @transform_1, window_bounds = array<i64: 8, 256>}, {pipeline_mode = #tpu.pipeline_mode<synchronous>, transform_indices = @transform_2, window_bounds = array<i64: 8, 8>}, {transform_indices = @transform_3, window_bounds = array<i64: 1, 16, 8>}, {transform_indices = @transform_4, window_bounds = array<i64: 1, 8, 256>}]} {
    %c0_i32 = arith.constant 0 : i32
    %0 = arith.cmpi eq, %arg2, %c0_i32 : i32
    %1 = arith.extui %0 : i1 to i32
    %c0_i32_0 = arith.constant 0 : i32
    %2 = arith.cmpi ne, %1, %c0_i32_0 : i32
    scf.if %2 {
      %cst_4 = arith.constant 0.000000e+00 : f32
      %16 = vector.broadcast %cst_4 : f32 to vector<8x256xf32>
      %c0_5 = arith.constant 0 : index
      %c0_6 = arith.constant 0 : index
      %17 = vector.load %arg10[%c0_5, %c0_6] : memref<8x256xf32, #tpu.memory_space<vmem>>, vector<8x256xf32>
      tpu.vector_store %arg10[%c0_5, %c0_6], %16 {strides = array<i32>} : memref<8x256xf32, #tpu.memory_space<vmem>>, vector<8x256xf32>,
      %cst_7 = arith.constant 1.000000e+00 : f32
      %18 = vector.broadcast %cst_7 : f32 to vector<1x256xf32>
      %c0_8 = arith.constant 0 : index
      %c0_9 = arith.constant 0 : index
      %19 = vector.load %arg11[%c0_8, %c0_9] : memref<1x256xf32, #tpu.memory_space<vmem>>, vector<1x256xf32>
      tpu.vector_store %arg11[%c0_8, %c0_9], %18 {strides = array<i32>} : memref<1x256xf32, #tpu.memory_space<vmem>>, vector<1x256xf32>,
      %cst_10 = arith.constant 1.000000e+00 : f32
      %c0_11 = arith.constant 0 : index
      %20 = memref.load %arg12[%c0_11] : memref<1xf32, #tpu.memory_space<smem>>
      memref.store %cst_10, %arg12[%c0_11] : memref<1xf32, #tpu.memory_space<smem>>
    } else {
    }
    %c1_i32 = arith.constant 1 : i32
    %3 = arith.muli %arg0, %c1_i32 : i32
    %4 = arith.addi %3, %arg1 : i32
    %5 = arith.index_cast %4 : i32 to index
    %6 = memref.load %arg4[%5] : memref<4xi32, #tpu.memory_space<smem>>
    %7 = arith.cmpi slt, %arg2, %6 : i32
    %c0 = arith.constant 0 : index
    %8 = memref.load %arg12[%c0] : memref<1xf32, #tpu.memory_space<smem>>
    %cst = arith.constant 9.99999974E-5 : f32
    %9 = arith.cmpf ogt, %8, %cst : f32
    %10 = arith.andi %7, %9 : i1
    %11 = arith.extui %10 : i1 to i32
    %c0_i32_1 = arith.constant 0 : i32
    %12 = arith.cmpi ne, %11, %c0_i32_1 : i32
    scf.if %12 {
      %c0_4 = arith.constant 0 : index
      %c0_5 = arith.constant 0 : index
      %c0_6 = arith.constant 0 : index
      %16 = vector.load %arg8[%c0_4, %c0_5, %c0_6] : memref<1x16x8xf32, #tpu.memory_space<vmem>>, vector<1x16x8xf32>
      %17 = vector.shape_cast %16 : vector<1x16x8xf32> to vector<16x8xf32>
      %18 = vector.extract_strided_slice %17 {offsets = [0, 0], sizes = [8, 8], strides = [1, 1]} : vector<16x8xf32> to vector<8x8xf32>
      %19 = vector.extract_strided_slice %17 {offsets = [8, 0], sizes = [8, 8], strides = [1, 1]} : vector<16x8xf32> to vector<8x8xf32>
      %c0_7 = arith.constant 0 : index
      %c0_8 = arith.constant 0 : index
      %20 = vector.load %arg6[%c0_7, %c0_8] : memref<8x256xf32, #tpu.memory_space<vmem>>, vector<8x256xf32>
      %cst_9 = arith.constant dense<0.000000e+00> : vector<8x256xf32>
      %21 = tpu.matmul %18, %20, %cst_9 {dimension_numbers = #tpu.dot_dimension_numbers<[0], [0], [1], [1], [0, 1, 1, 1], [], []>, precision = #tpu.contract_precision<fp32>} : vector<8x8xf32>, vector<8x256xf32>, vector<8x256xf32> -> vector<8x256xf32>
      %22 = math.exp2 %21 : vector<8x256xf32>
      %cst_10 = arith.constant 9.900000e-01 : f32
      %23 = vector.broadcast %cst_10 : f32 to vector<8x256xf32>
      %24 = arith.minimumf %23, %22 : vector<8x256xf32>
      %cst_11 = arith.constant 0.00392156886 : f32
      %25 = vector.broadcast %cst_11 : f32 to vector<8x256xf32>
      %26 = arith.cmpf olt, %24, %25 : vector<8x256xf32>
      %cst_12 = arith.constant 0.000000e+00 : f32
      %27 = vector.broadcast %cst_12 : f32 to vector<8x256xf32>
      %28 = arith.select %26, %27, %24 : vector<8x256xi1>, vector<8x256xf32>
      %cst_13 = arith.constant 1.000000e+00 : f32
      %29 = vector.broadcast %cst_13 : f32 to vector<8x256xf32>
      %30 = arith.subf %29, %28 : vector<8x256xf32>
      %31 = math.log %30 : vector<8x256xf32>
      %cst_14 = arith.constant 2.000000e+00 : f32
      %32 = math.log %cst_14 : f32
      %33 = vector.broadcast %32 : f32 to vector<8x256xf32>
      %34 = arith.divf %31, %33 : vector<8x256xf32>
      %c0_15 = arith.constant 0 : index
      %c0_16 = arith.constant 0 : index
      %35 = vector.load %arg7[%c0_15, %c0_16] : memref<8x8xf32, #tpu.memory_space<vmem>>, vector<8x8xf32>
      %cst_17 = arith.constant dense<0.000000e+00> : vector<8x256xf32>
      %36 = tpu.matmul %35, %34, %cst_17 {dimension_numbers = #tpu.dot_dimension_numbers<[1], [0], [0], [1], [0, 0, 1, 1], [], []>} : vector<8x8xf32>, vector<8x256xf32>, vector<8x256xf32> -> vector<8x256xf32>
      %37 = math.exp2 %36 : vector<8x256xf32>
      %c0_18 = arith.constant 0 : index
      %c0_19 = arith.constant 0 : index
      %38 = vector.load %arg11[%c0_18, %c0_19] : memref<1x256xf32, #tpu.memory_space<vmem>>, vector<1x256xf32>
      %39 = arith.mulf %28, %37 : vector<8x256xf32>
      %40 = vector.broadcast %38 : vector<1x256xf32> to vector<8x256xf32>
      %41 = arith.mulf %39, %40 : vector<8x256xf32>
      %c0_20 = arith.constant 0 : index
      %c0_21 = arith.constant 0 : index
      %42 = vector.load %arg10[%c0_20, %c0_21] : memref<8x256xf32, #tpu.memory_space<vmem>>, vector<8x256xf32>
      %cst_22 = arith.constant dense<0.000000e+00> : vector<8x256xf32>
      %43 = tpu.matmul %19, %41, %cst_22 {dimension_numbers = #tpu.dot_dimension_numbers<[1], [0], [0], [1], [0, 0, 1, 1], [], []>, precision = #tpu.contract_precision<fp32>} : vector<8x8xf32>, vector<8x256xf32>, vector<8x256xf32> -> vector<8x256xf32>
      %44 = arith.addf %42, %43 : vector<8x256xf32>
      %c0_23 = arith.constant 0 : index
      %c0_24 = arith.constant 0 : index
      %45 = vector.load %arg10[%c0_23, %c0_24] : memref<8x256xf32, #tpu.memory_space<vmem>>, vector<8x256xf32>
      tpu.vector_store %arg10[%c0_23, %c0_24], %44 {strides = array<i32>} : memref<8x256xf32, #tpu.memory_space<vmem>>, vector<8x256xf32>,
      %46 = vector.extract_strided_slice %37 {offsets = [7, 0], sizes = [1, 256], strides = [1, 1]} : vector<8x256xf32> to vector<1x256xf32>
      %47 = arith.mulf %38, %46 : vector<1x256xf32>
      %48 = vector.extract_strided_slice %30 {offsets = [7, 0], sizes = [1, 256], strides = [1, 1]} : vector<8x256xf32> to vector<1x256xf32>
      %49 = arith.mulf %47, %48 : vector<1x256xf32>
      %c0_25 = arith.constant 0 : index
      %c0_26 = arith.constant 0 : index
      %50 = vector.load %arg11[%c0_25, %c0_26] : memref<1x256xf32, #tpu.memory_space<vmem>>, vector<1x256xf32>
      tpu.vector_store %arg11[%c0_25, %c0_26], %49 {strides = array<i32>} : memref<1x256xf32, #tpu.memory_space<vmem>>, vector<1x256xf32>,
      %51 = vector.shape_cast %49 : vector<1x256xf32> to vector<1x1x256xf32>
      %cst_27 = arith.constant dense<0xFF800000> : vector<1xf32>
      %52 = vector.multi_reduction <maximumf>, %51, %cst_27 [1, 2] : vector<1x1x256xf32> to vector<1xf32>
      %53 = vector.shape_cast %52 : vector<1xf32> to vector<1x1x1xf32>
      %54 = vector.extract %53[0, 0, 0] : f32 from vector<1x1x1xf32>
      %c0_28 = arith.constant 0 : index
      %55 = memref.load %arg12[%c0_28] : memref<1xf32, #tpu.memory_space<smem>>
      memref.store %54, %arg12[%c0_28] : memref<1xf32, #tpu.memory_space<smem>>
    } else {
    }
    %c0_i32_2 = arith.constant 0 : i32
    %13 = arith.cmpi eq, %arg2, %c0_i32_2 : i32
    %14 = arith.extui %13 : i1 to i32
    %c0_i32_3 = arith.constant 0 : i32
    %15 = arith.cmpi ne, %14, %c0_i32_3 : i32
    scf.if %15 {
      %c0_4 = arith.constant 0 : index
      %c0_5 = arith.constant 0 : index
      %16 = vector.load %arg11[%c0_4, %c0_5] : memref<1x256xf32, #tpu.memory_space<vmem>>, vector<1x256xf32>
      %c0_6 = arith.constant 0 : index
      %c0_7 = arith.constant 0 : index
      %17 = vector.load %arg10[%c0_6, %c0_7] : memref<8x256xf32, #tpu.memory_space<vmem>>, vector<8x256xf32>
      %18 = vector.extract_strided_slice %17 {offsets = [0, 0], sizes = [1, 256], strides = [1, 1]} : vector<8x256xf32> to vector<1x256xf32>
      %c0_8 = arith.constant 0 : index
      %19 = memref.load %arg5[%c0_8] : memref<3xf32, #tpu.memory_space<smem>>
      %20 = vector.broadcast %19 : f32 to vector<1x256xf32>
      %21 = arith.mulf %16, %20 : vector<1x256xf32>
      %22 = arith.addf %18, %21 : vector<1x256xf32>
      %cst_9 = arith.constant 0.000000e+00 : f32
      %cst_10 = arith.constant 1.000000e+00 : f32
      %23 = vector.broadcast %cst_9 : f32 to vector<1x256xf32>
      %24 = arith.maximumf %23, %22 : vector<1x256xf32>
      %25 = vector.broadcast %cst_10 : f32 to vector<1x256xf32>
      %26 = arith.minimumf %25, %24 : vector<1x256xf32>
      %cst_11 = arith.constant 2.000000e+00 : f32
      %27 = vector.broadcast %cst_11 : f32 to vector<1x256xf32>
      %28 = arith.mulf %26, %27 : vector<1x256xf32>
      %cst_12 = arith.constant 1.000000e+00 : f32
      %29 = vector.broadcast %cst_12 : f32 to vector<1x256xf32>
      %30 = arith.subf %28, %29 : vector<1x256xf32>
      %31 = vector.extract_strided_slice %17 {offsets = [1, 0], sizes = [1, 256], strides = [1, 1]} : vector<8x256xf32> to vector<1x256xf32>
      %c1 = arith.constant 1 : index
      %32 = memref.load %arg5[%c1] : memref<3xf32, #tpu.memory_space<smem>>
      %33 = vector.broadcast %32 : f32 to vector<1x256xf32>
      %34 = arith.mulf %16, %33 : vector<1x256xf32>
      %35 = arith.addf %31, %34 : vector<1x256xf32>
      %cst_13 = arith.constant 0.000000e+00 : f32
      %cst_14 = arith.constant 1.000000e+00 : f32
      %36 = vector.broadcast %cst_13 : f32 to vector<1x256xf32>
      %37 = arith.maximumf %36, %35 : vector<1x256xf32>
      %38 = vector.broadcast %cst_14 : f32 to vector<1x256xf32>
      %39 = arith.minimumf %38, %37 : vector<1x256xf32>
      %cst_15 = arith.constant 2.000000e+00 : f32
      %40 = vector.broadcast %cst_15 : f32 to vector<1x256xf32>
      %41 = arith.mulf %39, %40 : vector<1x256xf32>
      %cst_16 = arith.constant 1.000000e+00 : f32
      %42 = vector.broadcast %cst_16 : f32 to vector<1x256xf32>
      %43 = arith.subf %41, %42 : vector<1x256xf32>
      %44 = vector.extract_strided_slice %17 {offsets = [2, 0], sizes = [1, 256], strides = [1, 1]} : vector<8x256xf32> to vector<1x256xf32>
      %c2 = arith.constant 2 : index
      %45 = memref.load %arg5[%c2] : memref<3xf32, #tpu.memory_space<smem>>
      %46 = vector.broadcast %45 : f32 to vector<1x256xf32>
      %47 = arith.mulf %16, %46 : vector<1x256xf32>
      %48 = arith.addf %44, %47 : vector<1x256xf32>
      %cst_17 = arith.constant 0.000000e+00 : f32
      %cst_18 = arith.constant 1.000000e+00 : f32
      %49 = vector.broadcast %cst_17 : f32 to vector<1x256xf32>
      %50 = arith.maximumf %49, %48 : vector<1x256xf32>
      %51 = vector.broadcast %cst_18 : f32 to vector<1x256xf32>
      %52 = arith.minimumf %51, %50 : vector<1x256xf32>
      %cst_19 = arith.constant 2.000000e+00 : f32
      %53 = vector.broadcast %cst_19 : f32 to vector<1x256xf32>
      %54 = arith.mulf %52, %53 : vector<1x256xf32>
      %cst_20 = arith.constant 1.000000e+00 : f32
      %55 = vector.broadcast %cst_20 : f32 to vector<1x256xf32>
      %56 = arith.subf %54, %55 : vector<1x256xf32>
      %cst_21 = arith.constant 1.000000e+00 : f32
      %57 = vector.broadcast %cst_21 : f32 to vector<1x256xf32>
      %58 = arith.subf %57, %16 : vector<1x256xf32>
      %cst_22 = arith.constant 0.000000e+00 : f32
      %cst_23 = arith.constant 1.000000e+00 : f32
      %59 = vector.broadcast %cst_22 : f32 to vector<1x256xf32>
      %60 = arith.maximumf %59, %58 : vector<1x256xf32>
      %61 = vector.broadcast %cst_23 : f32 to vector<1x256xf32>
      %62 = arith.minimumf %61, %60 : vector<1x256xf32>
      %63 = vector.extract_strided_slice %17 {offsets = [3, 0], sizes = [1, 256], strides = [1, 1]} : vector<8x256xf32> to vector<1x256xf32>
      %cst_24 = arith.constant 1.000000e+00 : f32
      %64 = vector.broadcast %cst_24 : f32 to vector<1x256xf32>
      %65 = arith.subf %64, %62 : vector<1x256xf32>
      %cst_25 = arith.constant 1.000000e+02 : f32
      %66 = vector.broadcast %cst_25 : f32 to vector<1x256xf32>
      %67 = arith.mulf %66, %65 : vector<1x256xf32>
      %68 = arith.addf %63, %67 : vector<1x256xf32>
      %cst_26 = arith.constant 0.000000e+00 : f32
      %69 = vector.broadcast %cst_26 : f32 to vector<3x256xf32>
      %70 = tpu.concatenate %30, %43, %56, %68, %62, %69 in 0 : vector<1x256xf32>, vector<1x256xf32>, vector<1x256xf32>, vector<1x256xf32>, vector<1x256xf32>, vector<3x256xf32> -> vector<8x256xf32>
      %c0_27 = arith.constant 0 : index
      %c0_28 = arith.constant 0 : index
      %c0_29 = arith.constant 0 : index
      %71 = vector.load %arg9[%c0_27, %c0_28, %c0_29] : memref<1x8x256xf32, #tpu.memory_space<vmem>>, vector<1x8x256xf32>
      %72 = vector.shape_cast %71 : vector<1x8x256xf32> to vector<8x256xf32>
      %73 = vector.shape_cast %70 : vector<8x256xf32> to vector<1x8x256xf32>
      tpu.vector_store %arg9[%c0_27, %c0_28, %c0_29], %73 {strides = array<i32>} : memref<1x8x256xf32, #tpu.memory_space<vmem>>, vector<1x8x256xf32>,
    } else {
    }
    return
  }
  func.func @transform_0(%arg0: i32, %arg1: i32, %arg2: i32, %arg3: memref<4xi32, #tpu.memory_space<smem>>, %arg4: memref<4xi32, #tpu.memory_space<smem>>) -> i32 {
    %c0_i32 = arith.constant 0 : i32
    %c0_i32_0 = arith.constant 0 : i32
    return %c0_i32 : i32
  }
  func.func @transform_1(%arg0: i32, %arg1: i32, %arg2: i32, %arg3: memref<4xi32, #tpu.memory_space<smem>>, %arg4: memref<4xi32, #tpu.memory_space<smem>>) -> (i32, i32) {
    %c0_i32 = arith.constant 0 : i32
    %c0_i32_0 = arith.constant 0 : i32
    return %c0_i32, %arg1 : i32, i32
  }
  func.func @transform_2(%arg0: i32, %arg1: i32, %arg2: i32, %arg3: memref<4xi32, #tpu.memory_space<smem>>, %arg4: memref<4xi32, #tpu.memory_space<smem>>) -> (i32, i32) {
    %c0_i32 = arith.constant 0 : i32
    %c0_i32_0 = arith.constant 0 : i32
    %c0_i32_1 = arith.constant 0 : i32
    return %c0_i32, %c0_i32_0 : i32, i32
  }
  func.func @transform_3(%arg0: i32, %arg1: i32, %arg2: i32, %arg3: memref<4xi32, #tpu.memory_space<smem>>, %arg4: memref<4xi32, #tpu.memory_space<smem>>) -> (i32, i32, i32) {
    %c1_i32 = arith.constant 1 : i32
    %0 = arith.muli %arg0, %c1_i32 : i32
    %1 = arith.addi %0, %arg1 : i32
    %c1_i32_0 = arith.constant 1 : i32
    %2 = arith.muli %1, %c1_i32_0 : i32
    %3 = arith.addi %2, %arg2 : i32
    %4 = arith.index_cast %3 : i32 to index
    %5 = memref.load %arg3[%4] : memref<4xi32, #tpu.memory_space<smem>>
    %c0_i32 = arith.constant 0 : i32
    %c0_i32_1 = arith.constant 0 : i32
    return %arg0, %c0_i32, %5 : i32, i32, i32
  }
  func.func @transform_4(%arg0: i32, %arg1: i32, %arg2: i32, %arg3: memref<4xi32, #tpu.memory_space<smem>>, %arg4: memref<4xi32, #tpu.memory_space<smem>>) -> (i32, i32, i32) {
    %c0_i32 = arith.constant 0 : i32
    %c0_i32_0 = arith.constant 0 : i32
    return %arg0, %c0_i32, %arg1 : i32, i32, i32
  }
}

</mosaic_0001>

<bundles_post_ra>
// kernel: tpu_custom_call.1
= control target key start
LH: loop header
LB: loop body
LE: loop exit
PB: predicated region body
PF: predicated region fallthrough
CT: control target
= control target key end

     0   :  { %s2253_s0 = inlined_call_operand.vmem [shape: s32[4], index: 0, kind: input, shape index: {}]   ;;  %s2254_s2 = inlined_call_operand.vmem [shape: f32[3], index: 2, kind: input, shape index: {}]   ;;  %s2255_s3 = inlined_call_operand.vmem [shape: f32[8,256], index: 3, kind: input, shape index: {}]   ;;  %s2256_s4 = inlined_call_operand.vmem [shape: f32[8,8], index: 4, kind: input, shape index: {}]   ;;  %s2257_s5 = inlined_call_operand.vmem [shape: f32[4,16,8], index: 5, kind: input, shape index: {}]   ;;  %s2258_s6 = inlined_call_operand.hbm [shape: f32[4,8,256], index: 6, kind: output, shape index: {}]   ;;  %s2259_s1 = inlined_call_operand.vmem [shape: s32[4], index: 1, kind: input, shape index: {}]  }
   0x1   :  { %s11_s23 = sshll.u32 %s2253_s0, 4  ;;  %s15_s26 = sshll.u32 %s2259_s1, 4  ;;  %s12_s23 = int_to_ptr.vmem [resolvable:$true] %s11_s23  ;;  %s16_s26 = int_to_ptr.vmem [resolvable:$true] %s15_s26 }
   0x2   :  { %s1864_s27 = scalar_lea.vmem %s12_s23, 16  ;;  %p1869_p1 = scmp.lt.s32.totalorder %s12_s23, %s12_s23 }
   0x3   :  { %p1865_p0 = scmp.ne.s32.totalorder %s12_s23, %s1864_s27  ;;  %p1870_p2 = scmp.lt.s32.totalorder %s1864_s27, %s1864_s27 }
   0x5   :  { %p1871_p3 = por %p1870_p2, %p1869_p1 }
   0x7   :  { %p1872_p4 = pnand %p1871_p3, %p1865_p0 }
   0x9   :  { %1875 = shalt.err (!%p1872_p4)  }
   0xa   :  { %s1990_s28 = smov [#allocation6]   ;;  %s1876_s29 = scalar_lea.vmem %s16_s26, 16 }
   0xb   :  { %14 = dma.vmem_to_smem %s12_s23, 16, %s1990_s28, [#allocation5] }
   0xc   :  { %p1877_p5 = scmp.ne.s32.totalorder %s16_s26, %s1876_s29  ;;  %p1881_p6 = scmp.lt.s32.totalorder %s16_s26, %s16_s26 }
   0xd   :  { %p1882_p7 = scmp.lt.s32.totalorder %s1876_s29, %s1876_s29 }
   0xf   :  { %p1883_p8 = por %p1882_p7, %p1881_p6 }
  0x11   :  { %p1884_p9 = pnand %p1883_p8, %p1877_p5 }
  0x13   :  { %1887 = shalt.err (!%p1884_p9)  }
  0x14   :  { %s1991_s0 = smov [#allocation7]  }
  0x15   :  { %18 = dma.vmem_to_smem %s16_s26, 16, %s1991_s0, [#allocation5] }
  0x16   :  { %1955 = dma.done.wait [#allocation5], 32 }
  0x17   :  { %1956 = vsyncadd [#allocation5], 4294967264 }
  0x18   :  { %20 = sfence }
  0x19   :  { %21 = vsyncpa [#allocation10], 0 }
  0x1a   :  { %22 = vsyncpa [#allocation9], 0 }
  0x1b   :  { %24 = vsyncpa [#allocation9 + $0x1], 0  ;;  %s2040_s1 = smov 0   ;;  %s2042_s30 = smov 0  }
  0x1c   :  { %s2044_s7 = smov 0   ;;  %s2046_s8 = smov 0  }
  0x1d   :  { %s2048_s9 = smov 0   ;;  %s2050_s10 = smov 0  }
  0x1e LB: > { %s1729_s11 = sadd.s32 4294967295, %s1988_s10   ;;  %s1730_s12 = sadd.s32 4294967294, %s1988_s10   ;;  %s1988_s10 = sphi %s2050_s10, %s30_s10   ;;  %s1984_s9 = sphi %s2048_s9, %s2270_s9   ;;  %s1980_s8 = sphi %s2046_s8, %s2269_s8   ;;  %s1976_s7 = sphi %s2044_s7, %s2268_s7   ;;  %s1972_s30 = sphi %s2042_s30, %s2267_s30   ;;  %s1968_s1 = sphi %s2040_s1, %s2266_s1  }
  0x1f   : > { %s49_s13 = sadd.s32 1, %s1984_s9  ;;  %s160_s14 = sadd.s32 1, %s1976_s7 }
  0x20   : > { %p51_p10 = scmp.ge.s32.totalorder %s49_s13, 4  ;;  %p170_p11 = scmp.ne.s32.totalorder %s1976_s7, %s1972_s30 }
  0x21   : > { %p171_p12 = scmp.eq.s32.totalorder %s1729_s11, 3  ;;  %p176_p13 = scmp.ne.s32.totalorder %s1972_s30, %s1968_s1 }
  0x22   : > { %s2272_s13 = smov (%p51_p10, %s49_s13), 0  ;;  %p177_p1 = scmp.eq.s32.totalorder %s1730_s12, 3 }
  0x23   : > { %p2080_p0 = por %p171_p12, %p170_p11  ;;  %s155_s16 = ssub.s32 %s1984_s9, %s2272_s13 }
  0x24   : > { %p1731_p2 = scmp.ge.s32.totalorder %s1988_s10, 1  ;;  %p158_p3 = scmp.eq.s32.totalorder %s155_s16, 0 }
  0x25   : > { %p2087_p4 = por %p177_p1, %p176_p13  ;;  %p184_p5 = scmp.lt.s32.totalorder %s1988_s10, 5 }
  0x26   : > { %s2093_s18 = scalar_select %p158_p3, %s1976_s7, %s160_s14  }
  0x27   : > { %p2095_p6 = pnand %p1731_p2, %p184_p5  ;;  %p2099_p7 = scmp.eq.s32.totalorder %s1729_s11, 0 }
  0x28   : > { %s197_s23 = sshll.u32 %s2254_s2, 4  ;;  %s198_s23 = int_to_ptr.vmem [resolvable:$true] %s197_s23 }
  0x29   : > { %p1784_p8 = pneg %p2095_p6  ;;  %s1888_s24 = scalar_lea.vmem %s198_s23, 16 }
  0x2a   : > { %p1889_p10 = scmp.ne.s32.totalorder %s198_s23, %s1888_s24  ;;  %p1896_p1 = scmp.lt.s32.totalorder %s198_s23, %s198_s23 }
  0x2b   : > { %p1785_p9 = pnand %p2099_p7, %p1784_p8  ;;  %p1897_p2 = scmp.lt.s32.totalorder %s1888_s24, %s1888_s24 }
  0x2d   : > { %p1890_p11 = pneg %p1785_p9  ;;  %p1898_p3 = por %p1897_p2, %p1896_p1 }
  0x2f   : > { %p1891_p12 = pnand %p1890_p11, %p1889_p10 }
  0x31   : > { %p1892_p13 = pneg %p1891_p12 }
  0x33   : > { %p1899_p5 = pnand %p1898_p3, %p1892_p13 }
  0x35   : > { %1902 = shalt.err (!%p1899_p5)
}
  0x36   : > { %s1992_s25 = smov [#allocation8]   ;;  %239 = sbr.rel (%p2095_p6) target bundleno = 1032 (0x408), region = 36 }
  0x37   : > { %1787 = dma.vmem_to_smem (!%p1785_p9), %s198_s23, 16, %s1992_s25, [#allocation10]  }
  0x3d   : > { %1958 = dma.done.wait (%p2099_p7), [#allocation10], 16  }
  0x3e   : > { %1960 = vsyncadd (%p2099_p7), [#allocation10], 4294967280 }
  0x3f   : > { %245 = sfence }
  0x40   : > { %s274_s26 = sand.u32 1, %s1972_s30   ;;  %s285_s27 = sld [smem:[#allocation6 + %s1980_s8]]  ;;  %v304_v0 = vlaneseq  ;;  %v1993_v1 = vmov 0.0   ;;  %v1994_v3 = vmov 1.0  }
  0x41   : > { %s1737_s28 = sshll.u32 %s274_s26, 4  ;;  %p286_p8 = scmp.lt.s32.totalorder %s1980_s8, 3  ;;  %302 = vst [vmem:[#allocation2] sm:$0xff] %v1993_v1  ;;  %303 = vst [vmem:[#allocation2 + $0x8] sm:$0xff] %v1993_v1 }
  0x42   : > { %vm2122_vm0 = vcmp.lt.s32.totalorder %v304_v0, 256  ;;  %s1995_s0 = smov 1.0   ;;  %s312_s11 = sld [smem:[#allocation7 + %s1980_s8]] }
  0x43   : > { %s287_s29 = scalar_select %p286_p8, %s1980_s8, 3  ;;  %308 = vst.msk [vmem:[#allocation3] sm:$0x3] %vm2122_vm0, %v1994_v3 }
  0x44   : > { %310 = sst [smem:[#allocation4]] %s1995_s0  ;;  %s2135_s22 = scalar_lea.vmem [#allocation11], %s1737_s28 }
  0x45   : > { %s1738_s12 = sshll.u32 %s287_s29, 1 }
  0x46   : > { %p288_p6 = scmp.lt.s32.totalorder %s285_s27, 0 }
  0x48   : > { %s2274_s27 = smov (!%p288_p6, %s285_s27), 0  ;;  %p1740_p7 = scmp.gt.s32.totalorder %s312_s11, 0 }
  0x49   : > { %s291_s14 = sadd.s32 %s1738_s12, %s2274_s27  ;;  %v323_v5 = vld [vmem:[%s2255_s3 + $0x8] sm:$0xff] (%p1740_p7)  ;;  %v322_v6 = vld [vmem:[%s2255_s3] sm:$0xff] (%p1740_p7)  ;;  %v1996_v9 = vmov (%p1740_p7), 0.0   ;;  %vm356_vm1 = vcmask (%p1740_p7), 64512   ;;  %v1997_v45 = vmov (%p1740_p7), 1966171168  }
  0x4a   : > { %s1739_s16 = sshll.u32 %s291_s14, 3  ;;  %319 = sbr.rel (!%p1740_p7) target bundleno = 992 (0x3e0), region = 48  ;;  %v360_v7 = vand.u32 (%p1740_p7), 4294901760, %v323_v5  ;;  %v362_v8 = vand.u32 (%p1740_p7), 4294901760, %v322_v6  ;;  %426 = vmatprep.mubr.f32.mxu0 (%p1740_p7), %v1996_v9  ;;  %910 = vmatprep.mubr.f32.mxu1 (%p1740_p7), %v1996_v9  ;;  %v842_v42 = vld [vmem:[%s2256_s4] sm:$0xff] (%p1740_p7)  ;;  %v1413_v46 = vunpack.c.l.s4 (%p1740_p7), %v1997_v45  ;;  %v924_v50 = vshrl.u32 (%p1740_p7), %v304_v0, 7 }
  0x4b   : > { %s2133_s21 = scalar_lea.vmem %s2257_s5, %s1739_s16  ;;  %v919_v55 = vld [vmem:[#allocation3] sm:$0x3] (%p1740_p7)  ;;  %vm1467_vm4 = vcmask (%p1740_p7), 1040384  }
  0x4c   : > { %v320_v4 = vld [vmem:[%s2133_s21] sm:$0xff] (%p1740_p7)  ;;  %361 = vmatprep.subr.mxu0 (%p1740_p7), %v360_v7  ;;  %v439_v10 = vsub.f32 (%p1740_p7), %v323_v5, %v360_v7  ;;  %v445_v14 = vsub.f32 (%p1740_p7), %v322_v6, %v362_v8  ;;  %v321_v43 = vld [vmem:[%s2133_s21 + $0x8] sm:$0xff] (%p1740_p7)  ;;  %v1414_v51 = vunpack.c.0.s8 (%p1740_p7), %v1413_v46  ;;  %v925_v53 = vsub.s32 (%p1740_p7), 0, %v924_v50 }
  0x4d   : > { %324 = vxpose.xlu0.b32.start.end [1/1] (short) (narrow) (%p1740_p7), %v320_v4, 8  ;;  %363 = vmatpush1.msra.mxu0 (%p1740_p7), %v362_v8  ;;  %v938_v44 = vsel (%p1740_p7), %vm356_vm1, %v321_v43, 0  ;;  %v929_v56 = vsub.s32 (%p1740_p7), 1, %v924_v50 }
  0x4e   : > { %v440_v11 = vand.u32 (%p1740_p7), 4294901760, %v439_v10  ;;  %v446_v17 = vand.u32 (%p1740_p7), 4294901760, %v445_v14  ;;  %v2159_v48 = vand.u32 (%p1740_p7), 4294901760, %v938_v44  ;;  %v1417_v54 = vsub.s32 (%p1740_p7), %v1414_v51, %v924_v50 }
  0x4f   : > { %v926_v58 = vrot.slane (%p1740_p7), %v919_v55, %v925_v53  ;;  %v930_v61 = vrot.slane (%p1740_p7), %v919_v55, %v929_v56 }
  0x50   : > { %v441_v12 = vsub.f32 (%p1740_p7), %v439_v10, %v440_v11  ;;  %v447_v20 = vsub.f32 (%p1740_p7), %v445_v14, %v446_v17  ;;  %v1008_v52 = vsub.f32 (%p1740_p7), %v938_v44, %v2159_v48 }
  0x52   : > { %v442_v13 = vand.u32 4294901760, %v441_v12  ;;  %v448_v23 = vand.u32 4294901760, %v447_v20  ;;  %v1009_v57 = vand.u32 4294901760, %v1008_v52 }
  0x54   : > { %443 = vmatprep.subr.mxu0 %v442_v13  ;;  %v1010_v4 = vsub.f32 %v1008_v52, %v1009_v57 }
  0x56   : > { %v1011_v13 = vand.u32 4294901760, %v1010_v4 }
  0xcd   : > { %v340_v15 = vpop.trf.xlu0 }
  0xce   : > { %v358_v16 = vsel %vm356_vm1, %v340_v15, 0 }
  0xcf   : > { %v427_v18 = vand.u32 4294901760, %v358_v16 }
  0xd1   : > { %v428_v19 = vsub.f32 %v358_v16, %v427_v18 }
  0xd3   : > { %v429_v21 = vand.u32 4294901760, %v428_v19 }
  0xd5   : > { %v430_v22 = vsub.f32 %v428_v19, %v429_v21 }
  0xd7   : > { %v431_v24 = vand.u32 4294901760, %v430_v22 }
  0xd9   : > { %432 = vmatmul.mubr.f32.vlgmr.msra.gmra.mrb[0].mxu0 %v431_v24 }
  0xda   : > { %449 = vmatpush1.msra.mxu0 %v448_v23  ;;  %512 = vmatprep.mubr.f32.mxu0 %v1996_v9 }
  0xdb   : > { %522 = vmatprep.subr.mxu0 %v439_v10 }
  0xe1   : > { %514 = vmatmul.mubr.f32.vlgmr.msra.gmra.mrb[0].mxu0 %v427_v18 }
  0xe2   : > { %525 = vmatpush1.msra.mxu0 %v445_v14  ;;  %588 = vmatprep.mubr.f32.mxu0 %v1996_v9 }
  0xe3   : > { %598 = vmatprep.subr.mxu0 %v360_v7 }
  0xe9   : > { %591 = vmatmul.mubr.f32.vlgmr.msra.gmra.mrb[0].mxu0 %v428_v19 }
  0xea   : > { %600 = vmatpush1.msra.mxu0 %v362_v8  ;;  %663 = vmatprep.mubr.f32.mxu0 %v1996_v9 }
  0xeb   : > { %676 = vmatprep.subr.mxu0 %v440_v11 }
  0xf1   : > { %667 = vmatmul.mubr.f32.vlgmr.msra.gmra.mrb[0].mxu0 %v429_v21 }
  0xf2   : > { %680 = vmatpush1.msra.mxu0 %v446_v17  ;;  %743 = vmatprep.mubr.f32.mxu0 %v1996_v9 }
  0xf3   : > { %752 = vmatprep.subr.mxu0 %v360_v7 }
  0xf9   : > { %745 = vmatmul.mubr.f32.vlgmr.msra.gmra.mrb[0].mxu0 %v427_v18 }
  0xfa   : > { %754 = vmatpush1.msra.mxu0 %v362_v8  ;;  %817 = vmatprep.mubr.f32.mxu0 %v1996_v9 }
 0x101   : > { %819 = vmatmul.mubr.f32.vlgmr.msra.gmra.mrb[0].mxu0 %v427_v18 }
 0x1d4   : > { %v820_v25 = vpop.f32.mrb[0].mxu0 }
 0x1d5   : > { %1851 = vpow2.f32 %v820_v25  ;;  %v822_v26 = vpop.f32.mrb[1].mxu0 }
 0x1d6   : > { %1853 = vpow2.f32 %v822_v26 }
 0x1df   : > { %v1852_v27 = vpop.eup %1851 }
 0x1e0   : > { %v1854_v28 = vpop.eup %1853  ;;  %v827_v29 = vmin.f32 %v1852_v27, 0.99 }
 0x1e1   : > { %v828_v30 = vmin.f32 %v1854_v28, 0.99 }
 0x1e2   : > { %vm829_vm2 = vcmp.lt.f32.partialorder %v827_v29, 0.003921569 }
 0x1e3   : > { %v831_v31 = vsel %vm829_vm2, 0.0, %v827_v29  ;;  %vm830_vm3 = vcmp.lt.f32.partialorder %v828_v30, 0.003921569 }
 0x1e4   : > { %v833_v32 = vsub.f32 1.0, %v831_v31  ;;  %v832_v33 = vsel %vm830_vm3, 0.0, %v828_v30 }
 0x1e5   : > { %v834_v34 = vsub.f32 1.0, %v832_v33 }
 0x1e6   : > { %1855 = vlog2.f32 %v833_v32 }
 0x1e7   : > { %1857 = vlog2.f32 %v834_v34  ;;  %v1432_v35 = vcombine.high %v833_v32, %v834_v34 }
 0x1e9   : > { %v1439_v60 = vrot.slane %v1432_v35, %v1417_v54 }
 0x1eb   : > { %v1440_v6 = vcombine.high %v1439_v60, %v1439_v60 }
 0x1ed   : > { %v1447_v17 = vrot.slane %v1440_v6, %v1417_v54 }
 0x1ef   : > { %v1448_v24 = vcombine.high %v1447_v17, %v1447_v17 }
 0x1f0   : > { %v1856_v36 = vpop.eup %1855 }
 0x1f1   : > { %v1858_v37 = vpop.eup %1857  ;;  %v836_v38 = vmul.f32 0.6931472, %v1856_v36 }
 0x1f2   : > { %v838_v39 = vmul.f32 0.6931472, %v1858_v37 }
 0x1f3   : > { %v840_v41 = vmul.f32 1.442695, %v836_v38 }
 0x1f4   : > { %v841_v40 = vmul.f32 1.442695, %v838_v39  ;;  %v935_v39 = vld [vmem:[#allocation2] sm:$0xff] }
 0x1f6   : > { %846 = vmatprep.subr.mxu1 %v841_v40  ;;  %v936_v40 = vld [vmem:[#allocation2 + $0x8] sm:$0xff] }
 0x1f7   : > { %847 = vmatpush1.msra.mxu1 %v840_v41 }
 0x1f8   : > { %1741 = vmatmul.mubr.msk.f32.vlgmr.msra.gmra.mrb[0].mxu1 %vm356_vm1, %v842_v42 }
 0x1f9   : > { %1006 = vmatprep.mubr.f32.mxu1 %v1996_v9 }
 0x2cb   : > { %v912_v47 = vpop.f32.mrb[0].mxu1 }
 0x2cc   : > { %1859 = vpow2.f32 %v912_v47  ;;  %v914_v49 = vpop.f32.mrb[1].mxu1 }
 0x2cd   : > { %1861 = vpow2.f32 %v914_v49 }
 0x2d6   : > { %v1860_v59 = vpop.eup %1859 }
 0x2d7   : > { %v1862_v62 = vpop.eup %1861  ;;  %v920_v63 = vmul.f32 %v1860_v59, %v831_v31 }
 0x2d8   : > { %v1411_v1 = vcombine.high %v1860_v59, %v1862_v62  ;;  %v921_v3 = vmul.f32 %v1862_v62, %v832_v33 }
 0x2d9   : > { %v933_v5 = vmul.f32 %v926_v58, %v920_v63 }
 0x2da   : > { %v1418_v7 = vrot.slane %v1411_v1, %v1417_v54  ;;  %v934_v8 = vmul.f32 %v930_v61, %v921_v3 }
 0x2db   : > { %v942_v10 = vand.u32 4294901760, %v933_v5 }
 0x2dc   : > { %v1419_v11 = vcombine.high %v1418_v7, %v1418_v7  ;;  %v940_v12 = vand.u32 4294901760, %v934_v8 }
 0x2dd   : > { %v1025_v14 = vsub.f32 %v933_v5, %v942_v10 }
 0x2de   : > { %941 = vmatprep.subr.mxu1 %v940_v12  ;;  %v1019_v15 = vsub.f32 %v934_v8, %v940_v12  ;;  %v1426_v16 = vrot.slane %v1419_v11, %v1417_v54 }
 0x2df   : > { %943 = vmatpush1.msra.mxu1 %v942_v10  ;;  %v1026_v18 = vand.u32 4294901760, %v1025_v14 }
 0x2e0   : > { %1012 = vmatmul.mubr.f32.vlgmr.msra.gmra.mrb[2].mxu1 %v1011_v13  ;;  %v1020_v19 = vand.u32 4294901760, %v1019_v15  ;;  %v1427_v20 = vcombine.high %v1426_v16, %v1426_v16 }
 0x2e1   : > { %v1027_v21 = vsub.f32 %v1025_v14, %v1026_v18  ;;  %1092 = vmatprep.mubr.f32.mxu1 %v1996_v9 }
 0x2e2   : > { %v1021_v22 = vsub.f32 %v1019_v15, %v1020_v19  ;;  %v1429_v23 = vmul.f32 %v1427_v20, %v919_v55 }
 0x2e3   : > { %v1028_v27 = vand.u32 4294901760, %v1027_v21 }
 0x2e4   : > { %v1022_v25 = vand.u32 4294901760, %v1021_v22  ;;  %v1450_v26 = vmul.f32 %v1448_v24, %v1429_v23 }
 0x2e6   : > { %1023 = vmatprep.subr.mxu1 %v1022_v25  ;;  %v1460_v28 = vrot.slane %v1450_v26, %v925_v53  ;;  %v1464_v29 = vrot.slane %v1450_v26, %v929_v56  ;;  %1455 = vst.msk [vmem:[#allocation3] sm:$0x3] %vm2122_vm0, %v1450_v26 }
 0x2e7   : > { %1029 = vmatpush1.msra.mxu1 %v1028_v27 }
 0x2e8   : > { %1094 = vmatmul.mubr.f32.vlgmr.msra.gmra.mrb[2].mxu1 %v2159_v48  ;;  %1102 = vmatprep.subr.mxu1 %v1019_v15  ;;  %v1468_v30 = vsel %vm1467_vm4, %v1460_v28, -inf  ;;  %v1469_v31 = vsel %vm1467_vm4, %v1464_v29, -inf }
 0x2e9   : > { %1105 = vmatpush1.msra.mxu1 %v1025_v14  ;;  %v1470_v32 = vmax.f32 %v1468_v30, %v1469_v31  ;;  %1168 = vmatprep.mubr.f32.mxu1 %v1996_v9 }
 0x2ea   : > { %1178 = vmatprep.subr.mxu1 %v940_v12 }
 0x2eb   : > { %1471 = vmax.xlane.f32.xlu0 %v1470_v32 }
 0x2f0   : > { %1171 = vmatmul.mubr.f32.vlgmr.msra.gmra.mrb[2].mxu1 %v1008_v52 }
 0x2f1   : > { %1180 = vmatpush1.msra.mxu1 %v942_v10  ;;  %1243 = vmatprep.mubr.f32.mxu1 %v1996_v9 }
 0x2f2   : > { %1256 = vmatprep.subr.mxu1 %v1020_v19 }
 0x2f8   : > { %1247 = vmatmul.mubr.f32.vlgmr.msra.gmra.mrb[2].mxu1 %v1009_v57 }
 0x2f9   : > { %1260 = vmatpush1.msra.mxu1 %v1026_v18  ;;  %1323 = vmatprep.mubr.f32.mxu1 %v1996_v9 }
 0x2fa   : > { %1332 = vmatprep.subr.mxu1 %v940_v12 }
 0x300   : > { %1325 = vmatmul.mubr.f32.vlgmr.msra.gmra.mrb[2].mxu1 %v2159_v48 }
 0x301   : > { %1334 = vmatpush1.msra.mxu1 %v942_v10  ;;  %1397 = vmatprep.mubr.f32.mxu1 %v1996_v9 }
 0x308   : > { %1399 = vmatmul.mubr.f32.vlgmr.msra.gmra.mrb[2].mxu1 %v2159_v48 }
 0x378   : > { %v1472_v2 = vpop.xlane.xlu0 %1471 }
 0x379   : > { %v1473_v33 = vrot.slane %v1472_v2, 4 }
 0x37b   : > { %v1474_v34 = vmax.f32 %v1472_v2, %v1473_v33 }
 0x37d   : > { %v1475_v35 = vrot.slane %v1474_v34, 2 }
 0x37f   : > { %v1476_v36 = vmax.f32 %v1474_v34, %v1475_v35 }
 0x381   : > { %v1477_v37 = vrot.slane %v1476_v36, 1 }
 0x383   : > { %v1478_v38 = vmax.f32 %v1476_v36, %v1477_v37 }
 0x385   : > { %1776 = vpush %v1478_v38 }
 0x3b6   : > { %s1777_s0 = spop %1776 }
 0x3b7   : > { %1481 = sst [smem:[#allocation4]] %s1777_s0 }
 0x3db   : > { %v1400_v41 = vpop.f32.mrb[2].mxu1 }
 0x3dc   : > { %v1405_v42 = vadd.f32 %v1400_v41, %v935_v39  ;;  %v1402_v43 = vpop.f32.mrb[3].mxu1 }
 0x3dd   : > { %v1406_v44 = vadd.f32 %v1402_v43, %v936_v40 }
 0x3de   : > { %1407 = vst [vmem:[#allocation2] sm:$0xff] %v1405_v42 }
 0x3df   : > { %1408 = vst [vmem:[#allocation2 + $0x8] sm:$0xff] %v1406_v44 }
 0x3e0 PF: > { %v1485_v9 = vld [vmem:[#allocation3] sm:$0x3]  ;;  %s1488_s11 = sld [smem:[#allocation8]]  ;;  %v1493_v45 = vshrl.u32 %v304_v0, 7  ;;  %s1744_s12 = sld [smem:[#allocation8 + $0x1]]  ;;  %vm1589_vm5 = vcmask 1040384  }
 0x3e1   : > { %s1747_s14 = sld [smem:[#allocation8 + $0x2]]  ;;  %v1560_v46 = vsub.f32 1.0, %v1485_v9  ;;  %vm1592_vm6 = vcmask 1041408   ;;  %vm1595_vm7 = vcmask 1042432   ;;  %vm1598_vm8 = vcmask 1043456   ;;  %s1755_s16 = sshll.u32 %s1980_s8, 8 }
 0x3e2   : > { %v2174_v48 = vsub.s32 0, %v1493_v45  ;;  %v2178_v50 = vsub.s32 1, %v1493_v45  ;;  %s1623_s19 = sshll.u32 %s2135_s22, 4  ;;  %vm1601_vm9 = vcmask 1044480   ;;  %s2202_s23 = scalar_lea.hbm %s2258_s6, %s1755_s16  ;;  %s2204_s19 = int_to_ptr.vmem [resolvable:$true] %s1623_s19 }
 0x3e3   : > { %v1561_v47 = vmax.f32 %v1560_v46, 0.0  ;;  %s1607_s8 = scalar_lea.sflag [#allocation9], %s274_s26  ;;  %s1903_s24 = scalar_lea.vmem %s2204_s19, 256 }
 0x3e4   : > { %p1904_p9 = scmp.ne.s32.totalorder %s2204_s19, %s1903_s24  ;;  %s1998_s25 = smov [#allocation11]  }
 0x3e5   : > { %v2176_v49 = vmin.f32 %v1561_v47, 1.0  ;;  %v1486_v56 = vld [vmem:[#allocation2] sm:$0xff]  ;;  %s1907_s29 = sshll.u32 %s1998_s25, 4  ;;  %s1908_s29 = int_to_ptr.vmem [resolvable:$false] %s1907_s29 }
 0x3e6   : > { %v1489_v51 = vstv %s1488_s11  ;;  %v1513_v53 = vstv %s1744_s12  ;;  %v1487_v0 = vld [vmem:[#allocation2 + $0x8] sm:$0xff]  ;;  %p1905_p10 = pnand %p1904_p9, %p2080_p0  ;;  %s1909_s27 = scalar_lea.vmem %s1908_s29, 512 }
 0x3e7   : > { %v1490_v52 = vmul.f32 %v1489_v51, %v1485_v9  ;;  %v1537_v54 = vstv %s1747_s14  ;;  %v1563_v55 = vsub.f32 1.0, %v2176_v49  ;;  %v1514_v57 = vmul.f32 %v1513_v53, %v1485_v9  ;;  %p1910_p12 = scmp.lt.s32.totalorder %s2204_s19, %s1908_s29  ;;  %p1911_p13 = scmp.lt.s32.totalorder %s1909_s27, %s1903_s24 }
 0x3e8   : > { %v1538_v58 = vmul.f32 %v1537_v54, %v1485_v9  ;;  %v1582_v38 = vrot.slane %v2176_v49, %v2174_v48  ;;  %v1586_v39 = vrot.slane %v2176_v49, %v2178_v50  ;;  %p1906_p11 = pneg %p1905_p10 }
 0x3e9   : > { %v1495_v59 = vrot.slane %v1490_v52, %v2174_v48  ;;  %v1499_v60 = vrot.slane %v1490_v52, %v2178_v50  ;;  %v1519_v61 = vrot.slane %v1514_v57, %v2174_v48  ;;  %v1523_v63 = vrot.slane %v1514_v57, %v2178_v50  ;;  %p1912_p1 = por %p1911_p13, %p1910_p12 }
 0x3ea   : > { %v1543_v62 = vrot.slane %v1538_v58, %v2174_v48  ;;  %v1547_v1 = vrot.slane %v1538_v58, %v2178_v50  ;;  %v1564_v4 = vmul.f32 100.0, %v1563_v55 }
 0x3eb   : > { %v1502_v3 = vadd.f32 %v1495_v59, %v1486_v56  ;;  %v1503_v5 = vadd.f32 %v1499_v60, %v1487_v0  ;;  %v1526_v6 = vadd.f32 %v1519_v61, %v1486_v56  ;;  %v1527_v8 = vadd.f32 %v1523_v63, %v1487_v0  ;;  %p1913_p2 = pnand %p1912_p1, %p1906_p11 }
 0x3ec   : > { %v1550_v7 = vadd.f32 %v1543_v62, %v1486_v56  ;;  %v1551_v10 = vadd.f32 %v1547_v1, %v1487_v0  ;;  %v1569_v18 = vrot.slane %v1564_v4, %v2174_v48  ;;  %v1573_v20 = vrot.slane %v1564_v4, %v2178_v50 }
 0x3ed   : > { %v1504_v11 = vmax.f32 %v1502_v3, 0.0  ;;  %v1505_v12 = vmax.f32 %v1503_v5, 0.0  ;;  %v1528_v13 = vmax.f32 %v1526_v6, 0.0  ;;  %v1529_v15 = vmax.f32 %v1527_v8, 0.0 }
 0x3ee   : > { %v1552_v14 = vmax.f32 %v1550_v7, 0.0  ;;  %v1553_v16 = vmax.f32 %v1551_v10, 0.0  ;;  %v1576_v32 = vadd.f32 %v1569_v18, %v1486_v56  ;;  %v1577_v33 = vadd.f32 %v1573_v20, %v1487_v0 }
 0x3ef   : > { %v1506_v17 = vmin.f32 %v1504_v11, 1.0  ;;  %v1507_v19 = vmin.f32 %v1505_v12, 1.0  ;;  %v1530_v21 = vmin.f32 %v1528_v13, 1.0  ;;  %v1531_v23 = vmin.f32 %v1529_v15, 1.0 }
 0x3f0   : > { %v1554_v22 = vmin.f32 %v1552_v14, 1.0  ;;  %v1555_v24 = vmin.f32 %v1553_v16, 1.0 }
 0x3f1   : > { %v1508_v25 = vmul.f32 2.0, %v1506_v17  ;;  %v1509_v26 = vmul.f32 2.0, %v1507_v19  ;;  %v1532_v27 = vmul.f32 2.0, %v1530_v21  ;;  %v1533_v29 = vmul.f32 2.0, %v1531_v23 }
 0x3f2   : > { %v1556_v28 = vmul.f32 2.0, %v1554_v22  ;;  %v1557_v30 = vmul.f32 2.0, %v1555_v24 }
 0x3f3   : > { %v1742_v31 = vadd.f32 -1.0, %v1508_v25  ;;  %v1743_v2 = vadd.f32 -1.0, %v1509_v26  ;;  %v1745_v34 = vadd.f32 -1.0, %v1532_v27  ;;  %v1746_v36 = vadd.f32 -1.0, %v1533_v29 }
 0x3f4   : > { %v1748_v35 = vadd.f32 -1.0, %v1556_v28  ;;  %v1749_v37 = vadd.f32 -1.0, %v1557_v30 }
 0x3f5   : > { %v1590_v40 = vsel %vm1589_vm5, %v1742_v31, %v1745_v34  ;;  %v1591_v41 = vsel %vm1589_vm5, %v1743_v2, %v1746_v36 }
 0x3f6   : > { %v1593_v42 = vsel %vm1592_vm6, %v1590_v40, %v1748_v35  ;;  %v1594_v43 = vsel %vm1592_vm6, %v1591_v41, %v1749_v37 }
 0x3f7   : > { %v1596_v44 = vsel %vm1595_vm7, %v1593_v42, %v1576_v32  ;;  %v1597_v9 = vsel %vm1595_vm7, %v1594_v43, %v1577_v33 }
 0x3f8   : > { %v1599_v45 = vsel %vm1598_vm8, %v1596_v44, %v1582_v38  ;;  %v1600_v46 = vsel %vm1598_vm8, %v1597_v9, %v1586_v39 }
 0x3f9   : > { %v1602_v47 = vsel %vm1601_vm9, %v1599_v45, 0.0  ;;  %v1603_v48 = vsel %vm1601_vm9, %v1600_v46, 0.0 }
 0x3fa   : > { %1604 = vst [vmem:[%s2135_s22] sm:$0xff] %v1602_v47  ;;  %1605 = vst [vmem:[%s2135_s22 + $0x8] sm:$0xff] %v1603_v48 }
 0x3fb   : > { %1916 = shalt.err (!%p1913_p2)
}
 0x3fc   : > { %s1917_s26 = scalar_lea.hbm %s2202_s23, 256  ;;  %s1921_s0 = scalar_lea.hbm %s2258_s6, 1024 }
 0x3fd   : > { %p1918_p3 = scmp.ne.s32.totalorder %s2202_s23, %s1917_s26  ;;  %p1922_p6 = scmp.lt.u32.totalorder %s2202_s23, %s2258_s6 }
 0x3fe   : > { %p1923_p7 = scmp.lt.u32.totalorder %s1921_s0, %s1917_s26  ;;  %p1925_p10 = scmp.lt.u32.totalorder %s1917_s26, %s2202_s23 }
 0x3ff   : > { %p1919_p5 = pnand %p1918_p3, %p2080_p0 }
 0x400   : > { %p1924_p9 = por %p1923_p7, %p1922_p6 }
 0x401   : > { %p1920_p8 = pneg %p1919_p5 }
 0x402   : > { %p1926_p11 = por %p1925_p10, %p1924_p9 }
 0x404   : > { %p1927_p12 = pnand %p1926_p11, %p1920_p8 }
 0x406   : > { %1930 = shalt.err (!%p1927_p12)
}
 0x407   : > { %1782 = dma.vmem_to_hbm [thread:$0]  (%p2080_p0), %s2204_s19, 256, %s2202_s23, %s1607_s8  }
 0x408 PF: > { %p1794_p13 = scmp.ge.s32.totalorder %s1988_s10, 2  ;;  %s1635_s14 = sand.u32 1, %s1968_s1  }
 0x409   : > { %s1636_s16 = scalar_lea.sflag [#allocation9], %s1635_s14 }
 0x40a   : > { %p1789_p1 = pnand %p1794_p13, %p2087_p4 }
 0x40c   : > { %1962 = dma.done.wait (!%p1789_p1), %s1636_s16, 256  }
 0x40d   : > { %1964 = vsyncadd (!%p1789_p1), %s1636_s16, 4294967040  ;;  %s30_s10 = sadd.s32 1, %s1988_s10   ;;  %s2266_s1 = smov %s1972_s30 }
 0x40e   : > { %p27_p2 = scmp.ge.s32.totalorder %s30_s10, 6   ;;  %s2267_s30 = smov %s1976_s7 }
 0x40f   : > { %s2268_s7 = smov %s2093_s18  ;;  %s2269_s8 = smov %s1984_s9 }
 0x410   : > { %s2270_s9 = smov %s2272_s13  ;;  %29 = sbr.rel (!%p27_p2) target bundleno = 30 (0x1e), region = 93 }
 0x417   :  { %1641 = vsyncpa [#allocation9], 1 }
 0x418   :  { %1643 = vsyncpa [#allocation9 + $0x1], 1 }
 0x419   :  { %1644 = vsyncpa [#allocation10], 1 }
 0x41a   :  { %1646 = vsyncpa [#allocation10 + $0x1], 1 }

</bundles_post_ra>
